<compile_context>
chip_gen: v7x
topology: tpu7x:2x2x1
jax: 0.10.0
libtpu: 0.0.40
codegen_flags: <defaults>
</compile_context>

<pallas_src>
import functools

import jax
import jax.numpy as jnp
from jax.experimental import pallas as pl
from jax.experimental.pallas import tpu as pltpu

_EPS = 1e-10
# Per-input, per-pipeline-buffer VMEM target. 2 inputs x 2 buffers -> ~8 MiB, which fits the
# default scoped-VMEM limit on v5e (16 MiB), v6e (32 MiB) and v7x (32 MiB).
_DEFAULT_TARGET_BLOCK_BYTES = 2 * 1024 * 1024
# Below this class count use the grouped lane-dense path; at/above it the [N, C] row-major
# layout is already lane-dense on the class axis.  (Review: sweep 128-256; 128 is safe.)
_LANE_DENSE_MAX_CLASSES = 128


# --------------------------------------------------------------------------------------
# Host-side helpers (static tiling decisions).
# --------------------------------------------------------------------------------------
def _pick_tile(total, unit, budget, min_blocks=8):
    """Tile along one axis: a multiple of `unit` (or the full extent), at most `budget`
    elements, and small enough to give ~min_blocks grid blocks when the extent allows it
    (keeps both v7x TensorCores busy and the DMA pipeline double-buffered)."""
    if total <= unit:
        return total
    cap = max(unit, (budget // unit) * unit)
    want = pl.cdiv(total, min_blocks)
    want = pl.cdiv(want, unit) * unit
    tile = min(cap, want)
    return total if tile >= total else tile


def _pick_group(n, c, *, max_group=64, max_lanes=1024):
    """Choose how many whole samples `g` to fold into each row for the lane-dense path.

    g must divide N (so the reshape is free), g*C is capped, and we prefer (a) high lane
    utilization of the 128-lane vreg axis, then (b) keeping more rows for grid blocking.
    """
    def best(min_rows):
        bg, score = 0, (-1.0, -1)
        for g in range(1, max_group + 1):
            if n % g or g * c > max_lanes or (n // g) < min_rows:
                continue
            w = g * c
            util = w / (pl.cdiv(w, 128) * 128)
            s = (util, n // g)
            if s > score:
                bg, score = g, s
        return bg
    return best(8) or best(1)


def _cost_estimate(n, c, itemsize):
    # Advisory only: lets XLA schedule neighboring ops around the otherwise-opaque call.
    return pl.CostEstimate(flops=int(12 * n * c),
                           transcendentals=int(3 * n * c),
                           bytes_accessed=int(2 * n * c * itemsize + 4 * n))


def _maybe_vmem_limit(in_block_bytes, target_block_bytes):
    # Default 2 MiB blocks fit every generation's scoped-VMEM default; only override the
    # limit when the caller asks for bigger blocks (v5e's 16 MiB default is the constraint).
    if target_block_bytes <= _DEFAULT_TARGET_BLOCK_BYTES:
        return None
    return int(min(96 << 20, 8 * in_block_bytes + (8 << 20)))


# --------------------------------------------------------------------------------------
# Kernel bodies.
# --------------------------------------------------------------------------------------
def _js_terms(p, q, low_precision_logs):
    """Per-element JS integrand with the shared log(m) factored out (3 logs, 0 divides)."""
    eps = jnp.float32(_EPS)
    if low_precision_logs:
        # EUP has native bf16 transcendentals on v6e/v7x: ~2x log throughput when the kernel
        # is EUP-bound, at ~1e-3 relative error.  Multiplies / sums stay in f32.
        log = lambda x: jnp.log(x.astype(jnp.bfloat16)).astype(jnp.float32)
    else:
        log = jnp.log
    m = (p + q) * jnp.float32(0.5)
    log_m = log(m + eps)
    return p * (log(p + eps) - log_m) + q * (log(q + eps) - log_m)


def _js_kernel_grouped(p_ref, q_ref, o_ref, *, group, num_classes, low_precision_logs):
    # p_ref / q_ref: [tile_rows, group*num_classes] -- `group` whole samples per VMEM row,
    # so the class data sits densely on the 128-lane axis (no wrapper transpose needed).
    p = p_ref[...].astype(jnp.float32)
    q = q_ref[...].astype(jnp.float32)

    # Sanitize so vreg lane padding / out-of-bounds rows of edge blocks (stale VMEM garbage)
    # can never become NaN/Inf inside the logs and leak through the reduction matmul below.
    # Real probability inputs (finite, >= 0) are unchanged.  Do NOT move this below the logs.
    big = jnp.float32(1e30)
    p = jnp.minimum(jnp.where(p > 0, p, 0.0), big)
    q = jnp.minimum(jnp.where(q > 0, q, 0.0), big)

    t = _js_terms(p, q, low_precision_logs)

    # Per-sample class sums via one small MXU matmul (MXU is otherwise idle here):
    #   sel[k, j] = 1  iff lane k belongs to sample j, i.e. j*C <= k < (j+1)*C.
    # Built in-kernel with iota/compare so its padding is well-defined (zeros), not DMA junk.
    w = group * num_classes
    lane = jax.lax.broadcasted_iota(jnp.int32, (w, group), 0)
    samp = jax.lax.broadcasted_iota(jnp.int32, (w, group), 1)
    lo = samp * num_classes
    sel = ((lane >= lo) & (lane < lo + num_classes)).astype(jnp.float32)

    js = jnp.dot(t, sel, preferred_element_type=jnp.float32)        # [tile_rows, group]
    o_ref[...] = (jnp.float32(0.5) * js).astype(o_ref.dtype)


def _js_kernel_row_major(p_ref, q_ref, o_ref, acc_ref, *, tile_c, num_classes,
                         mask_last, low_precision_logs):
    # p_ref / q_ref: [tile_n, tile_c]; grid = (N blocks, C blocks); C is the reduction axis.
    k = pl.program_id(1)
    nk = pl.num_programs(1)

    @pl.when(k == 0)
    def _():
        acc_ref[...] = jnp.zeros_like(acc_ref)

    p = p_ref[...].astype(jnp.float32)
    q = q_ref[...].astype(jnp.float32)
    t = _js_terms(p, q, low_precision_logs)

    if mask_last:
        # Only the final C tile can read past the true class count, so full tiles pay no
        # iota/compare/select cost.  Keep the mask BEFORE the accumulate (padding columns of
        # the last tile hold stale-VMEM garbage / possibly NaN).
        @pl.when(k < nk - 1)
        def _():
            acc_ref[...] += jnp.sum(t, axis=1, keepdims=True)

        @pl.when(k == nk - 1)
        def _():
            col = k * tile_c + jax.lax.broadcasted_iota(jnp.int32, t.shape, 1)
            tm = jnp.where(col < num_classes, t, jnp.float32(0.0))
            acc_ref[...] += jnp.sum(tm, axis=1, keepdims=True)
    else:
        acc_ref[...] += jnp.sum(t, axis=1, keepdims=True)

    @pl.when(k == nk - 1)
    def _():
        o_ref[...] = (jnp.float32(0.5) * acc_ref[...]).astype(o_ref.dtype)


# --------------------------------------------------------------------------------------
# Wrappers.
# --------------------------------------------------------------------------------------
def _js_grouped(p, q, n, c, itemsize, target_block_bytes, low_precision_logs):
    g = _pick_group(n, c)
    w = g * c
    rows = n // g
    pg = p.reshape(rows, w)   # free: row-major contiguity is preserved (no HBM pass)
    qg = q.reshape(rows, w)

    budget_rows = max(8, (target_block_bytes // (w * itemsize)) // 8 * 8)
    tile_rows = _pick_tile(rows, 8, budget_rows)
    grid = (pl.cdiv(rows, tile_rows),)
    in_block_bytes = tile_rows * w * itemsize

    kernel = functools.partial(_js_kernel_grouped, group=g, num_classes=c,
                               low_precision_logs=low_precision_logs)
    out = pl.pallas_call(
        kernel,
        out_shape=jax.ShapeDtypeStruct((rows, g), jnp.float32),
        grid=grid,
        in_specs=[pl.BlockSpec((tile_rows, w), lambda i: (i, 0)),
                  pl.BlockSpec((tile_rows, w), lambda i: (i, 0))],
        out_specs=pl.BlockSpec((tile_rows, g), lambda i: (i, 0)),
        compiler_params=pltpu.CompilerParams(
            dimension_semantics=("parallel",),
            vmem_limit_bytes=_maybe_vmem_limit(in_block_bytes, target_block_bytes)),
        cost_estimate=_cost_estimate(n, c, itemsize),
    )(pg, qg)
    return out.reshape(n)      # free reshape back to [N]


def _js_row_major(p, q, n, c, itemsize, target_block_bytes, low_precision_logs):
    if c * 8 * itemsize <= target_block_bytes:
        tile_c = c                       # whole rows fit one block; single C step
    else:
        tile_c = max(128, (target_block_bytes // (8 * itemsize)) // 128 * 128)
    budget_n = max(8, (target_block_bytes // (tile_c * itemsize)) // 8 * 8)
    tile_n = _pick_tile(n, 8, budget_n)
    grid = (pl.cdiv(n, tile_n), pl.cdiv(c, tile_c))
    mask_last = (c % tile_c) != 0
    in_block_bytes = tile_n * tile_c * itemsize

    kernel = functools.partial(_js_kernel_row_major, tile_c=tile_c, num_classes=c,
                               mask_last=mask_last, low_precision_logs=low_precision_logs)
    out = pl.pallas_call(
        kernel,
        out_shape=jax.ShapeDtypeStruct((n, 1), jnp.float32),
        grid=grid,
        in_specs=[pl.BlockSpec((tile_n, tile_c), lambda i, k: (i, k)),
                  pl.BlockSpec((tile_n, tile_c), lambda i, k: (i, k))],
        out_specs=pl.BlockSpec((tile_n, 1), lambda i, k: (i, 0)),
        scratch_shapes=[pltpu.VMEM((tile_n, 1), jnp.float32)],
        compiler_params=pltpu.CompilerParams(
            dimension_semantics=("parallel", "arbitrary"),
            vmem_limit_bytes=_maybe_vmem_limit(in_block_bytes, target_block_bytes)),
        cost_estimate=_cost_estimate(n, c, itemsize),
    )(p, q)
    return out[:, 0]


def jensen_shannon(p, q, *, target_block_bytes=_DEFAULT_TARGET_BLOCK_BYTES,
                   low_precision_logs=False):
    """Pallas TPU Jensen-Shannon divergence.  p, q: [N, C] probabilities -> [N] float32."""
    assert p.shape == q.shape and p.ndim == 2
    n, c = p.shape
    itemsize = jnp.dtype(p.dtype).itemsize
    if c < _LANE_DENSE_MAX_CLASSES:
        return _js_grouped(p, q, n, c, itemsize, target_block_bytes, low_precision_logs)
    return _js_row_major(p, q, n, c, itemsize, target_block_bytes, low_precision_logs)


# --------------------------------------------------------------------------------------
# Reference + tests.
# --------------------------------------------------------------------------------------
def _reference_js(p, q):
    eps = 1e-10
    m = (p + q) / 2.0
    kl = lambda a, b: jnp.sum(a * jnp.log((a + eps) / (b + eps)), axis=1)
    return 0.5 * kl(p, m) + 0.5 * kl(q, m)


def _make_probs(key, shape):
    return jax.nn.softmax(jax.random.normal(key, shape, dtype=jnp.float32), axis=1)


if __name__ == "__main__":
    keys = jax.random.split(jax.random.PRNGKey(0), 10)

    def check(name, n, c, *, target=_DEFAULT_TARGET_BLOCK_BYTES, low_precision=False,
              atol=1e-5, rtol=1e-4, k0=0):
        p = _make_probs(keys[k0], (n, c))
        q = _make_probs(keys[k0 + 1], (n, c))
        out = jax.block_until_ready(
            jensen_shannon(p, q, target_block_bytes=target,
                           low_precision_logs=low_precision))
        ref = _reference_js(p, q)
        assert out.shape == (n,), (name, out.shape)
        assert bool(jnp.all(jnp.isfinite(out))), name
        assert jnp.allclose(out, ref, atol=atol, rtol=rtol), (name, out, ref)

    # 1) Clothing1M-style class count (C=14) -> grouped lane-dense path (g=8), no transpose.
    check("small_C", 64, 14, k0=0)
    # 2) Grouped path with several grid blocks and a partial last row block (g=12, rows=10).
    check("small_C_partial", 120, 10, k0=2)
    # 3) Odd batch size -> degenerate group g=1 still correct.
    check("odd_N", 37, 6, k0=4)
    # 4) Large class count with a small block budget -> row-major path, tiled C reduction
    #    with the mask applied only on the final (partial) C tile.
    check("large_C_tiled", 48, 200, target=4096, k0=6)
    # 5) Large class count, single C tile (no masking, single reduction step).
    check("large_C_single", 40, 256, k0=8)
    # 6) Opt-in bf16 logs (EUP lever on v6e/v7x) -- looser tolerance by design.
    check("bf16_logs", 64, 14, low_precision=True, atol=0.08, rtol=0.15, k0=0)

    print("KERNEL_OK")
</pallas_src>

<mosaic_0001>
module attributes {stable_mosaic.version = 11 : i64} {
  func.func @_js_kernel_grouped(%arg0: i32, %arg1: memref<8x112xf32, #tpu.memory_space<vmem>>, %arg2: memref<8x112xf32, #tpu.memory_space<vmem>>, %arg3: memref<8x8xf32, #tpu.memory_space<vmem>>) attributes {dimension_semantics = [#tpu.dimension_semantics<parallel>], iteration_bounds = array<i64: 1>, scalar_prefetch = 0 : i64, scratch_operands = 0 : i64, tpu.core_type = #tpu.core_type<tc>, window_params = [{transform_indices = @transform_0, window_bounds = array<i64: 8, 112>}, {transform_indices = @transform_1, window_bounds = array<i64: 8, 112>}, {transform_indices = @transform_2, window_bounds = array<i64: 8, 8>}]} {
    %c0 = arith.constant 0 : index
    %c0_0 = arith.constant 0 : index
    %0 = vector.load %arg1[%c0, %c0_0] : memref<8x112xf32, #tpu.memory_space<vmem>>, vector<8x112xf32>
    %c0_1 = arith.constant 0 : index
    %c0_2 = arith.constant 0 : index
    %1 = vector.load %arg2[%c0_1, %c0_2] : memref<8x112xf32, #tpu.memory_space<vmem>>, vector<8x112xf32>
    %cst = arith.constant 0.000000e+00 : f32
    %2 = vector.broadcast %cst : f32 to vector<8x112xf32>
    %3 = arith.cmpf ogt, %0, %2 : vector<8x112xf32>
    %cst_3 = arith.constant 0.000000e+00 : f32
    %4 = vector.broadcast %cst_3 : f32 to vector<8x112xf32>
    %5 = arith.select %3, %0, %4 : vector<8x112xi1>, vector<8x112xf32>
    %cst_4 = arith.constant 1.000000e+30 : f32
    %6 = vector.broadcast %cst_4 : f32 to vector<8x112xf32>
    %7 = arith.minimumf %5, %6 : vector<8x112xf32>
    %cst_5 = arith.constant 0.000000e+00 : f32
    %8 = vector.broadcast %cst_5 : f32 to vector<8x112xf32>
    %9 = arith.cmpf ogt, %1, %8 : vector<8x112xf32>
    %cst_6 = arith.constant 0.000000e+00 : f32
    %10 = vector.broadcast %cst_6 : f32 to vector<8x112xf32>
    %11 = arith.select %9, %1, %10 : vector<8x112xi1>, vector<8x112xf32>
    %cst_7 = arith.constant 1.000000e+30 : f32
    %12 = vector.broadcast %cst_7 : f32 to vector<8x112xf32>
    %13 = arith.minimumf %11, %12 : vector<8x112xf32>
    %14 = arith.addf %7, %13 : vector<8x112xf32>
    %cst_8 = arith.constant 5.000000e-01 : f32
    %15 = vector.broadcast %cst_8 : f32 to vector<8x112xf32>
    %16 = arith.mulf %14, %15 : vector<8x112xf32>
    %cst_9 = arith.constant 1.000000e-10 : f32
    %17 = vector.broadcast %cst_9 : f32 to vector<8x112xf32>
    %18 = arith.addf %16, %17 : vector<8x112xf32>
    %19 = math.log %18 : vector<8x112xf32>
    %cst_10 = arith.constant 1.000000e-10 : f32
    %20 = vector.broadcast %cst_10 : f32 to vector<8x112xf32>
    %21 = arith.addf %7, %20 : vector<8x112xf32>
    %22 = math.log %21 : vector<8x112xf32>
    %23 = arith.subf %22, %19 : vector<8x112xf32>
    %24 = arith.mulf %7, %23 : vector<8x112xf32>
    %cst_11 = arith.constant 1.000000e-10 : f32
    %25 = vector.broadcast %cst_11 : f32 to vector<8x112xf32>
    %26 = arith.addf %13, %25 : vector<8x112xf32>
    %27 = math.log %26 : vector<8x112xf32>
    %28 = arith.subf %27, %19 : vector<8x112xf32>
    %29 = arith.mulf %13, %28 : vector<8x112xf32>
    %30 = arith.addf %24, %29 : vector<8x112xf32>
    %31 = tpu.iota {dimensions = array<i32: 0>} : vector<112x8xi32>
    %32 = tpu.iota {dimensions = array<i32: 1>} : vector<112x8xi32>
    %c14_i32 = arith.constant 14 : i32
    %33 = vector.broadcast %c14_i32 : i32 to vector<112x8xi32>
    %34 = arith.muli %32, %33 : vector<112x8xi32>
    %35 = arith.cmpi sge, %31, %34 : vector<112x8xi32>
    %c14_i32_12 = arith.constant 14 : i32
    %36 = vector.broadcast %c14_i32_12 : i32 to vector<112x8xi32>
    %37 = arith.addi %34, %36 : vector<112x8xi32>
    %38 = arith.cmpi slt, %31, %37 : vector<112x8xi32>
    %39 = arith.andi %35, %38 : vector<112x8xi1>
    %40 = arith.extui %39 : vector<112x8xi1> to vector<112x8xi32>
    %41 = arith.sitofp %40 : vector<112x8xi32> to vector<112x8xf32>
    %cst_13 = arith.constant dense<0.000000e+00> : vector<8x8xf32>
    %42 = tpu.matmul %30, %41, %cst_13 {dimension_numbers = #tpu.dot_dimension_numbers<[1], [0], [0], [1], [0, 0, 1, 1], [], []>} : vector<8x112xf32>, vector<112x8xf32>, vector<8x8xf32> -> vector<8x8xf32>
    %cst_14 = arith.constant 5.000000e-01 : f32
    %43 = vector.broadcast %cst_14 : f32 to vector<8x8xf32>
    %44 = arith.mulf %43, %42 : vector<8x8xf32>
    %c0_15 = arith.constant 0 : index
    %c0_16 = arith.constant 0 : index
    %45 = vector.load %arg3[%c0_15, %c0_16] : memref<8x8xf32, #tpu.memory_space<vmem>>, vector<8x8xf32>
    tpu.vector_store %arg3[%c0_15, %c0_16], %44 {strides = array<i32>} : memref<8x8xf32, #tpu.memory_space<vmem>>, vector<8x8xf32>,
    return
  }
  func.func @transform_0(%arg0: i32) -> (i32, i32) {
    %c0_i32 = arith.constant 0 : i32
    %c0_i32_0 = arith.constant 0 : i32
    return %arg0, %c0_i32 : i32, i32
  }
  func.func @transform_1(%arg0: i32) -> (i32, i32) {
    %c0_i32 = arith.constant 0 : i32
    %c0_i32_0 = arith.constant 0 : i32
    return %arg0, %c0_i32 : i32, i32
  }
  func.func @transform_2(%arg0: i32) -> (i32, i32) {
    %c0_i32 = arith.constant 0 : i32
    %c0_i32_0 = arith.constant 0 : i32
    return %arg0, %c0_i32 : i32, i32
  }
}

</mosaic_0001>

<bundles_post_ra>
// kernel: tpu_custom_call.1
= control target key start
LH: loop header
LB: loop body
LE: loop exit
PB: predicated region body
PF: predicated region fallthrough
CT: control target
= control target key end

     0   :  { %7 = vsyncpa [#allocation3], 0  ;;  %s595_s0 = inlined_call_operand.hbm [shape: f32[8,112], index: 0, kind: input, shape index: {}]   ;;  %s596_s1 = inlined_call_operand.hbm [shape: f32[8,112], index: 1, kind: input, shape index: {}]   ;;  %s597_s2 = inlined_call_operand.hbm [shape: f32[8,8], index: 2, kind: output, shape index: {}]  }
   0x1   :  { %8 = vsyncpa [#allocation6], 0 }
   0x2   :  { %9 = vsyncpa [#allocation4], 0  ;;  %s423_s9 = smov [#allocation2]   ;;  %s424_s11 = smov [#allocation5]  }
   0x3   :  { %s16_s10 = sshll.u32 %s423_s9, 4  ;;  %s26_s12 = sshll.u32 %s424_s11, 4  ;;  %s17_s10 = int_to_ptr.vmem [resolvable:$true] %s16_s10  ;;  %s27_s12 = int_to_ptr.vmem [resolvable:$true] %s26_s12 }
   0x4   :  { %s351_s15 = scalar_lea.hbm %s595_s0, 128 }
   0x5   :  { %p352_p0 = scmp.ne.s32.totalorder %s595_s0, %s351_s15  ;;  %p355_p1 = scmp.lt.u32.totalorder %s351_s15, %s595_s0 }
   0x7   :  { %p357_p2 = pnand %p355_p1, %p352_p0 }
   0x9   :  { %360 = shalt.err (!%p357_p2)
}
   0xa   :  { %s361_s20 = scalar_lea.vmem %s17_s10, 128  ;;  %p366_p4 = scmp.lt.s32.totalorder %s17_s10, %s17_s10 }
   0xb   :  { %p362_p3 = scmp.ne.s32.totalorder %s17_s10, %s361_s20  ;;  %p367_p5 = scmp.lt.s32.totalorder %s361_s20, %s361_s20 }
   0xd   :  { %p368_p6 = por %p367_p5, %p366_p4 }
   0xf   :  { %p369_p7 = pnand %p368_p6, %p362_p3 }
  0x11   :  { %372 = shalt.err (!%p369_p7)
}
  0x12   :  { %19 = dma.hbm_to_vmem [thread:$0]  %s595_s0, 128, %s17_s10, [#allocation3]  }
  0x13   :  { %s373_s25 = scalar_lea.hbm %s596_s1, 128 }
  0x14   :  { %p374_p8 = scmp.ne.s32.totalorder %s596_s1, %s373_s25  ;;  %p377_p9 = scmp.lt.u32.totalorder %s373_s25, %s596_s1 }
  0x16   :  { %p379_p10 = pnand %p377_p9, %p374_p8 }
  0x18   :  { %382 = shalt.err (!%p379_p10)
}
  0x19   :  { %s383_s30 = scalar_lea.vmem %s27_s12, 128  ;;  %p388_p12 = scmp.lt.s32.totalorder %s27_s12, %s27_s12 }
  0x1a   :  { %p384_p11 = scmp.ne.s32.totalorder %s27_s12, %s383_s30  ;;  %p389_p13 = scmp.lt.s32.totalorder %s383_s30, %s383_s30 }
  0x1c   :  { %p390_p0 = por %p389_p13, %p388_p12 }
  0x1e   :  { %p391_p1 = pnand %p390_p0, %p384_p11 }
  0x20   :  { %394 = shalt.err (!%p391_p1)
}
  0x21   :  { %29 = dma.hbm_to_vmem [thread:$0]  %s596_s1, 128, %s27_s12, [#allocation6]  }
  0x22   :  { %417 = dma.done.wait [#allocation3], 128  }
  0x23   :  { %418 = vsyncadd [#allocation3], 4294967168 }
  0x24   :  { %419 = dma.done.wait [#allocation6], 128  }
  0x25   :  { %420 = vsyncadd [#allocation6], 4294967168  ;;  %v60_v0 = vlaneseq  ;;  %v425_v1 = vmov 0.0|0.0   ;;  %vm426_vm0 = vmmov 0   ;;  %v427_v4 = vmov 0.0   ;;  %v36_v12 = vld [vmem:[#allocation2] sm:$0xff] }
  0x26   :  { %317 = vmatprep.subr.bf16.mxu0 %v425_v1  ;;  %314 = vmatprep.mubr.msk.f32.mxu0 %vm426_vm0, %v427_v4  ;;  %v428_v14 = vmov 1.0|1.0   ;;  %v37_v17 = vld [vmem:[#allocation5] sm:$0xff]  ;;  %vm38_vm15 = vcmp.gt.f32.partialorder %v36_v12, 0.0  ;;  %s429_s1 = smov [#allocation7]  }
  0x27   :  { %v470_v2 = vshrl.u32 %v60_v0, 7  ;;  %v76_v3 = vand.u32 127, %v60_v0  ;;  %v39_v21 = vsel %vm38_vm15, %v36_v12, 0.0  ;;  %s232_s4 = sshll.u32 %s429_s1, 4  ;;  %s233_s4 = int_to_ptr.vmem [resolvable:$true] %s232_s4 }
  0x28   :  { %v40_v23 = vmin.f32 %v39_v21, 1e+30  ;;  %s395_s5 = scalar_lea.vmem %s233_s4, 128  ;;  %p400_p3 = scmp.lt.s32.totalorder %s233_s4, %s233_s4 }
  0x29   :  { %v62_v5 = vadd.s32 8, %v470_v2  ;;  %v473_v6 = vmul.u32 14, %v76_v3  ;;  %v63_v7 = vadd.s32 16, %v470_v2  ;;  %v64_v9 = vadd.s32 24, %v470_v2  ;;  %p396_p2 = scmp.ne.s32.totalorder %s233_s4, %s395_s5  ;;  %p401_p4 = scmp.lt.s32.totalorder %s395_s5, %s395_s5 }
  0x2a   :  { %v65_v10 = vadd.s32 32, %v470_v2  ;;  %v66_v11 = vadd.s32 40, %v470_v2  ;;  %v67_v13 = vadd.s32 48, %v470_v2  ;;  %v68_v16 = vadd.s32 56, %v470_v2 }
  0x2b   :  { %vm78_vm1 = vcmp.ge.s32.totalorder %v470_v2, %v473_v6  ;;  %v479_v8 = vadd.s32 14, %v473_v6  ;;  %vm79_vm2 = vcmp.ge.s32.totalorder %v62_v5, %v473_v6  ;;  %vm80_vm6 = vcmp.ge.s32.totalorder %v63_v7, %v473_v6  ;;  %p402_p5 = por %p401_p4, %p400_p3 }
  0x2c   :  { %vm81_vm9 = vcmp.ge.s32.totalorder %v64_v9, %v473_v6  ;;  %vm82_vm13 = vcmp.ge.s32.totalorder %v65_v10, %v473_v6  ;;  %v69_v18 = vadd.s32 64, %v470_v2  ;;  %v70_v20 = vadd.s32 72, %v470_v2 }
  0x2d   :  { %vm93_vm3 = vcmp.lt.s32.totalorder %v470_v2, %v479_v8  ;;  %vm94_vm4 = vcmp.lt.s32.totalorder %v62_v5, %v479_v8  ;;  %vm95_vm7 = vcmp.lt.s32.totalorder %v63_v7, %v479_v8  ;;  %vm96_vm10 = vcmp.lt.s32.totalorder %v64_v9, %v479_v8  ;;  %p403_p6 = pnand %p402_p5, %p396_p2 }
  0x2e   :  { %vm107_vm5 = vmand %vm78_vm1, %vm93_vm3  ;;  %vm97_vm14 = vcmp.lt.s32.totalorder %v65_v10, %v479_v8  ;;  %vm83_vm1 = vcmp.ge.s32.totalorder %v66_v11, %v473_v6  ;;  %v71_v25 = vadd.s32 80, %v470_v2  ;;  %v72_v28 = vadd.s32 88, %v470_v2 }
  0x2f   :  { %vm108_vm8 = vmand %vm79_vm2, %vm94_vm4  ;;  %vm98_vm2 = vcmp.lt.s32.totalorder %v66_v11, %v479_v8  ;;  %vm84_vm4 = vcmp.ge.s32.totalorder %v67_v13, %v473_v6  ;;  %v49_v29 = vadd.f32 1e-10, %v40_v23  ;;  %v73_v36 = vadd.s32 96, %v470_v2 }
  0x30   :  { %vm318_vm11 = vmpackc.low %vm108_vm8, %vm107_vm5  ;;  %v74_v37 = vadd.s32 104, %v470_v2 }
  0x31   :  { %319 = vmatpush3.bf16.msk.msra.mxu0 %vm318_vm11, %v428_v14  ;;  %vm494_vm12 = vmand %vm80_vm6, %vm95_vm7  ;;  %vm99_vm6 = vcmp.lt.s32.totalorder %v67_v13, %v479_v8  ;;  %vm41_vm7 = vcmp.gt.f32.partialorder %v37_v17, 0.0  ;;  %345 = vlog2.f32 %v49_v29 }
  0x32   :  { %320 = vmatprep.subr.bf16.mxu0 %v425_v1  ;;  %vm110_vm0 = vmand %vm81_vm9, %vm96_vm10  ;;  %vm85_vm9 = vcmp.ge.s32.totalorder %v68_v16, %v473_v6  ;;  %vm100_vm10 = vcmp.lt.s32.totalorder %v68_v16, %v479_v8  ;;  %v42_v24 = vsel %vm41_vm7, %v37_v17, 0.0  ;;  %vm89_vm7 = vcmp.ge.s32.totalorder %v72_v28, %v473_v6 }
  0x33   :  { %vm321_vm3 = vmpackc.low %vm110_vm0, %vm494_vm12  ;;  %v43_v26 = vmin.f32 %v42_v24, 1e+30  ;;  %vm87_vm0 = vcmp.ge.s32.totalorder %v70_v20, %v473_v6 }
  0x34   :  { %vm508_vm5 = vmand %vm82_vm13, %vm97_vm14  ;;  %vm86_vm13 = vcmp.ge.s32.totalorder %v69_v18, %v473_v6  ;;  %vm101_vm14 = vcmp.lt.s32.totalorder %v69_v18, %v479_v8 }
  0x35   :  { %322 = vmatpush3.bf16.msk.msra.mxu0 %vm321_vm3, %v428_v14  ;;  %vm515_vm8 = vmand %vm83_vm1, %vm98_vm2  ;;  %vm102_vm1 = vcmp.lt.s32.totalorder %v70_v20, %v479_v8  ;;  %v44_v31 = vadd.f32 %v43_v26, %v40_v23  ;;  %v54_v32 = vadd.f32 1e-10, %v43_v26 }
  0x36   :  { %323 = vmatprep.subr.bf16.mxu0 %v425_v1  ;;  %vm324_vm11 = vmpackc.low %vm515_vm8, %vm508_vm5  ;;  %vm103_vm5 = vcmp.lt.s32.totalorder %v71_v25, %v479_v8  ;;  %vm104_vm8 = vcmp.lt.s32.totalorder %v72_v28, %v479_v8 }
  0x37   :  { %vm529_vm12 = vmand %vm84_vm4, %vm99_vm6  ;;  %vm88_vm4 = vcmp.ge.s32.totalorder %v71_v25, %v473_v6  ;;  %v45_v34 = vmul.f32 0.5, %v44_v31  ;;  %347 = vlog2.f32 %v54_v32 }
  0x38   :  { %vm536_vm15 = vmand %vm85_vm9, %vm100_vm10 }
  0x39   :  { %325 = vmatpush3.bf16.msk.msra.mxu0 %vm324_vm11, %v428_v14  ;;  %vm327_vm2 = vmpackc.low %vm536_vm15, %vm529_vm12  ;;  %v46_v38 = vadd.f32 1e-10, %v45_v34  ;;  %vm90_vm12 = vcmp.ge.s32.totalorder %v73_v36, %v473_v6  ;;  %vm106_vm15 = vcmp.lt.s32.totalorder %v74_v37, %v479_v8 }
  0x3a   :  { %326 = vmatprep.subr.bf16.mxu0 %v425_v1  ;;  %vm548_vm3 = vmand %vm86_vm13, %vm101_vm14  ;;  %vm105_vm13 = vcmp.lt.s32.totalorder %v73_v36, %v479_v8  ;;  %vm91_vm14 = vcmp.ge.s32.totalorder %v74_v37, %v473_v6 }
  0x3b   :  { %vm554_vm6 = vmand %vm87_vm0, %vm102_vm1  ;;  %349 = vlog2.f32 %v46_v38  ;;  %v346_v40 = vpop.eup %345 }
  0x3c   :  { %vm330_vm9 = vmpackc.low %vm554_vm6, %vm548_vm3  ;;  %v51_v42 = vmul.f32 0.6931472, %v346_v40 }
  0x3d   :  { %328 = vmatpush3.bf16.msk.msra.mxu0 %vm327_vm2, %v428_v14  ;;  %vm567_vm10 = vmand %vm88_vm4, %vm103_vm5  ;;  %vm149_vm4 = vcmask 916480   ;;  %vm224_vm5 = vcmask 64512  }
  0x3e   :  { %329 = vmatprep.subr.bf16.mxu0 %v425_v1  ;;  %vm118_vm11 = vmand %vm89_vm7, %vm104_vm8 }
  0x3f   :  { %vm333_vm0 = vmpackc.low %vm118_vm11, %vm567_vm10 }
  0x40   :  { %vm119_vm1 = vmand %vm90_vm12, %vm105_vm13 }
  0x41   :  { %331 = vmatpush3.bf16.msk.msra.mxu0 %vm330_vm9, %v428_v14  ;;  %vm120_vm2 = vmand %vm91_vm14, %vm106_vm15  ;;  %v348_v41 = vpop.eup %347 }
  0x42   :  { %332 = vmatprep.subr.bf16.mxu0 %v425_v1  ;;  %vm336_vm3 = vmpackc.low %vm120_vm2, %vm119_vm1  ;;  %v56_v43 = vmul.f32 0.6931472, %v348_v41 }
  0x45   :  { %334 = vmatpush3.bf16.msk.msra.mxu0 %vm333_vm0, %v428_v14  ;;  %v350_v44 = vpop.eup %349 }
  0x46   :  { %335 = vmatprep.subr.bf16.mxu0 %v425_v1  ;;  %v48_v45 = vmul.f32 0.6931472, %v350_v44 }
  0x48   :  { %v52_v46 = vsub.f32 %v51_v42, %v48_v45  ;;  %v57_v47 = vsub.f32 %v56_v43, %v48_v45 }
  0x49   :  { %337 = vmatpush3.bf16.msk.msra.mxu0 %vm336_vm3, %v428_v14 }
  0x4a   :  { %v53_v48 = vmul.f32 %v52_v46, %v40_v23  ;;  %v58_v49 = vmul.f32 %v57_v47, %v43_v26 }
  0x4c   :  { %v59_v50 = vadd.f32 %v58_v49, %v53_v48 }
  0x4e   :  { %315 = vmatmul.mubr.msk.f32.vlgmr.msra.gmra.mrb[0].mxu0 %vm149_vm4, %v59_v50 }
 0x121   :  { %v219_v51 = vpop.f32.mrb[0].mxu0 }
 0x122   :  { %v223_v52 = vmul.f32 0.5, %v219_v51  ;;  %v316_v53 = vpop.f32.mrb[1].mxu0 }
 0x124   :  { %225 = vst.msk [vmem:[#allocation7] sm:$0xff] %vm224_vm5, %v223_v52 }
 0x125   :  { %406 = shalt.err (!%p403_p6)
}
 0x126   :  { %s407_s8 = scalar_lea.hbm %s597_s2, 128 }
 0x127   :  { %p408_p7 = scmp.ne.s32.totalorder %s597_s2, %s407_s8  ;;  %p411_p8 = scmp.lt.u32.totalorder %s407_s8, %s597_s2 }
 0x129   :  { %p413_p9 = pnand %p411_p8, %p408_p7 }
 0x12b   :  { %416 = shalt.err (!%p413_p9)
}
 0x12c   :  { %235 = dma.vmem_to_hbm [thread:$0]  %s233_s4, 128, %s597_s2, [#allocation4]  }
 0x12d   :  { %421 = dma.done.wait [#allocation4], 128  }
 0x12e   :  { %422 = vsyncadd [#allocation4], 4294967168 }
 0x12f   :  { %239 = vsyncpa [#allocation3], 1 }
 0x130   :  { %240 = vsyncpa [#allocation6], 1 }
 0x131   :  { %241 = vsyncpa [#allocation4], 1 }

</bundles_post_ra>
